<compile_context>
chip_gen: v6e
topology: v6e:2x2x1
jax: 0.10.0
libtpu: 0.0.40
codegen_flags: <defaults>
</compile_context>

<pallas_src>
import jax
import jax.numpy as jnp
from jax.experimental import pallas as pl
from jax.experimental.pallas import tpu as pltpu


def _round_up(x: int, m: int) -> int:
    return ((x + m - 1) // m) * m


# ---------------------------------------------------------------------------
# Single-buffered constant blocks (feature-detected so older JAX still runs).
# ---------------------------------------------------------------------------
def _detect_single_buffer():
    buffered = getattr(pl, "Buffered", None)
    if buffered is None:
        return None
    try:
        pl.BlockSpec((8, 128), lambda i: (0, 0), pipeline_mode=buffered(1))
        return buffered
    except Exception:
        return None


_BUFFERED1 = _detect_single_buffer()


def _const_spec(shape, index_map):
    if _BUFFERED1 is not None:
        return pl.BlockSpec(shape, index_map, pipeline_mode=_BUFFERED1(1))
    return pl.BlockSpec(shape, index_map)


# ---------------------------------------------------------------------------
# Kernel
# ---------------------------------------------------------------------------
def make_gcml_kernel(alpha: float, mm_dtype):
    power = float(alpha + 1.0) / 2.0
    inv_alpha = 1.0 / float(alpha)

    def gcml_kernel(x_ref, w_enc_ref, b_enc_ref, w_dec_ref, b_dec_ref,
                    c_t_ref, c_sq_ref, xrec_ref, pdist_ref):
        x = x_ref[...]                                       # [TB, Dp]

        # ---- encode: hidden = x @ W_enc + b_enc (MXU, f32 accumulate) ----
        hidden = jnp.dot(x, w_enc_ref[...],
                         preferred_element_type=jnp.float32) + b_enc_ref[...]
        h_mm = hidden.astype(mm_dtype)

        # ---- decode: x_rec = hidden @ W_dec + b_dec ----------------------
        x_rec = jnp.dot(h_mm, w_dec_ref[...],
                        preferred_element_type=jnp.float32) + b_dec_ref[...]
        xrec_ref[...] = x_rec.astype(xrec_ref.dtype)

        # ---- Student-t soft assignment via MXU matmul expansion ----------
        # d2[i,j] = ||h_i||^2 + ||c_j||^2 - 2 h_i . c_j ; padded cluster
        # columns carry a huge ||c||^2 so they contribute ~0 downstream.
        h_sq = jnp.sum(hidden * hidden, axis=1, keepdims=True)   # [TB, 1]
        cross = jnp.dot(h_mm, c_t_ref[...],
                        preferred_element_type=jnp.float32)      # [TB, Kp]
        d2 = jnp.maximum(h_sq + c_sq_ref[...] - 2.0 * cross, 0.0)

        if power == 1.0:
            p = pl.reciprocal(1.0 + d2 * inv_alpha, approx=True)  # EUP
        else:
            # (1 + d2/alpha)^(-power); log1p is accurate near d2 ~ 0
            p = jnp.exp(-power * jnp.log1p(d2 * inv_alpha))

        # Exact row normalization (only TB reciprocals): rows sum to 1 to
        # float precision (the approx EUP path here cost ~1e-3 in the sum).
        denom = jnp.sum(p, axis=1, keepdims=True)                 # [TB, 1]
        pdist_ref[...] = (p * (1.0 / denom)).astype(pdist_ref.dtype)

    return gcml_kernel


# ---------------------------------------------------------------------------
# Wrapper
# ---------------------------------------------------------------------------
_PAD_CSQ = 1e30                 # folded into ||c||^2 for padded cluster columns
_VMEM_TILE_BUDGET = 40 << 20    # conservative: fits v7x's 64 MiB per-TC VMEM
_VMEM_LIMIT_CAP = 56 << 20


def _pad_2d(a, rows, cols, dtype):
    a = jnp.asarray(a, dtype)
    if a.shape == (rows, cols):
        return a
    return jnp.zeros((rows, cols), dtype).at[:a.shape[0], :a.shape[1]].set(a)


def prepare_gcml_params(w_enc, b_enc, w_dec, b_dec, centers,
                        use_bf16_matmul=False):
    """Pad / cast parameters once, outside the per-batch hot path."""
    D_in, H = w_enc.shape
    K = centers.shape[0]
    Dp, Hp, Kp = _round_up(D_in, 128), _round_up(H, 128), _round_up(K, 128)
    f32 = jnp.float32
    w_dtype = jnp.bfloat16 if use_bf16_matmul else f32

    w_enc_p = _pad_2d(w_enc, Dp, Hp, w_dtype)
    w_dec_p = _pad_2d(w_dec, Hp, Dp, w_dtype)
    b_enc_p = _pad_2d(jnp.reshape(b_enc, (1, H)), 1, Hp, f32)
    b_dec_p = _pad_2d(jnp.reshape(b_dec, (1, D_in)), 1, Dp, f32)

    c_f32 = _pad_2d(centers, Kp, Hp, f32)
    c_sq = jnp.sum(c_f32 * c_f32, axis=1, keepdims=True).T          # [1, Kp]
    if Kp > K:
        c_sq = c_sq.at[:, K:].set(jnp.float32(_PAD_CSQ))
    c_t = c_f32.T.astype(w_dtype)                                   # [Hp, Kp]

    dims = dict(D_in=D_in, H=H, K=K, Dp=Dp, Hp=Hp, Kp=Kp)
    return (w_enc_p, b_enc_p, w_dec_p, b_dec_p, c_t, c_sq), dims


def _vmem_footprint(TB, Dp, Hp, Kp, x_bytes, w_bytes, const_buffers):
    const_bytes = const_buffers * ((Dp * Hp + Hp * Dp + Hp * Kp) * w_bytes
                                   + (Hp + Dp + Kp) * 4)
    io_bytes = 2 * TB * Dp * x_bytes            # x tiles (double-buffered)
    io_bytes += 2 * TB * (Dp + Kp) * 4          # x_rec / p_dist tiles
    return const_bytes + io_bytes


def gcml_forward_prepared(x, params, dims, alpha=1.0, batch_tile=512,
                          use_bf16_matmul=False):
    w_enc_p, b_enc_p, w_dec_p, b_dec_p, c_t, c_sq = params
    B, D_in = x.shape
    assert D_in == dims["D_in"]
    Dp, Hp, Kp, K = dims["Dp"], dims["Hp"], dims["Kp"], dims["K"]

    f32 = jnp.float32
    mm_dtype = jnp.bfloat16 if use_bf16_matmul else f32
    x_bytes = 2 if use_bf16_matmul else 4
    w_bytes = x_bytes
    const_buffers = 1 if _BUFFERED1 is not None else 2

    # ---- batch tile selection --------------------------------------------
    TB = min(int(batch_tile), _round_up(B, 8))
    # v7x has 2 TensorCores: keep >= 2 "parallel" grid steps when B allows.
    if TB >= B and B >= 16:
        TB = _round_up((B + 1) // 2, 8)
    # Shrink to fit a conservative cross-generation VMEM budget.
    while TB > 8 and _vmem_footprint(TB, Dp, Hp, Kp, x_bytes, w_bytes,
                                     const_buffers) > _VMEM_TILE_BUDGET:
        TB = max(8, _round_up(TB // 2, 8))
    Bp = _round_up(B, TB)

    footprint = _vmem_footprint(TB, Dp, Hp, Kp, x_bytes, w_bytes, const_buffers)
    vmem_limit = int(min(max(footprint * 1.25 + (2 << 20), 32 << 20),
                         _VMEM_LIMIT_CAP))

    # No-op skip: only pad/cast x when it is not already in kernel layout.
    x_p = x if (x.shape == (Bp, Dp) and x.dtype == mm_dtype) \
        else _pad_2d(x, Bp, Dp, mm_dtype)

    kernel = make_gcml_kernel(alpha, mm_dtype)

    row = lambda i: (i, 0)        # batch-tiled operands
    const = lambda i: (0, 0)      # VMEM-resident operands

    out_shape = (
        jax.ShapeDtypeStruct((Bp, Dp), f32),   # x_rec  (padded)
        jax.ShapeDtypeStruct((Bp, Kp), f32),   # p_dist (padded, lane-dense)
    )

    x_rec_p, p_dist_p = pl.pallas_call(
        kernel,
        out_shape=out_shape,
        grid_spec=pltpu.PrefetchScalarGridSpec(
            num_scalar_prefetch=0,
            grid=(Bp // TB,),
            in_specs=[
                pl.BlockSpec((TB, Dp), row),        # x
                _const_spec((Dp, Hp), const),       # W_enc
                _const_spec((1, Hp), const),        # b_enc
                _const_spec((Hp, Dp), const),       # W_dec
                _const_spec((1, Dp), const),        # b_dec
                _const_spec((Hp, Kp), const),       # centers^T
                _const_spec((1, Kp), const),        # ||centers||^2 (+pad fold)
            ],
            out_specs=[
                pl.BlockSpec((TB, Dp), row),        # x_rec
                pl.BlockSpec((TB, Kp), row),        # p_dist
            ],
        ),
        compiler_params=pltpu.CompilerParams(
            dimension_semantics=("parallel",),
            vmem_limit_bytes=vmem_limit,
        ),
    )(x_p, w_enc_p, b_enc_p, w_dec_p, b_dec_p, c_t, c_sq)

    x_rec = x_rec_p if (Bp == B and Dp == D_in) else x_rec_p[:B, :D_in]
    p_dist = p_dist_p if (Bp == B and Kp == K) else p_dist_p[:B, :K]
    return x_rec, p_dist


def gcml_forward(x, w_enc, b_enc, w_dec, b_dec, centers, alpha=1.0,
                 batch_tile=512, use_bf16_matmul=False):
    """Fused GCML forward. Returns (x_rec [B, D_in], p_dist [B, K])."""
    params, dims = prepare_gcml_params(w_enc, b_enc, w_dec, b_dec, centers,
                                       use_bf16_matmul)
    return gcml_forward_prepared(x, params, dims, alpha=alpha,
                                 batch_tile=batch_tile,
                                 use_bf16_matmul=use_bf16_matmul)


# ---------------------------------------------------------------------------
# Pure-JAX reference
# ---------------------------------------------------------------------------
def gcml_reference(x, w_enc, b_enc, w_dec, b_dec, centers, alpha=1.0):
    hidden = x @ w_enc + b_enc
    x_rec = hidden @ w_dec + b_dec
    p_squared = jnp.sum((hidden[:, None, :] - centers[None, :, :]) ** 2, axis=2)
    p = 1.0 / (1.0 + p_squared / alpha)
    p = p ** (float(alpha + 1.0) / 2.0)
    p_dist = p / jnp.sum(p, axis=1, keepdims=True)
    return x_rec, p_dist


if __name__ == "__main__":
    # Small, deterministic shapes consistent with the module.
    B, D_in, H, K = 8, 64, 32, 8
    alpha = 1.0

    key = jax.random.PRNGKey(0)
    kx, ke, kd, kc = jax.random.split(key, 4)

    x = jax.random.normal(kx, (B, D_in), dtype=jnp.float32)

    # Deterministic synthetic dense autoencoder parameters.
    # TODO(synk): the PyTorch module takes an arbitrary autoencoder submodule;
    # it is modeled here as a single dense encode/decode layer.
    w_enc = jax.random.normal(ke, (D_in, H), dtype=jnp.float32) / jnp.sqrt(float(D_in))
    b_enc = jnp.zeros((1, H), dtype=jnp.float32)
    w_dec = jax.random.normal(kd, (H, D_in), dtype=jnp.float32) / jnp.sqrt(float(H))
    b_dec = jnp.zeros((1, D_in), dtype=jnp.float32)

    # cluster_centers with xavier_normal_ init: std = sqrt(2 / (fan_in + fan_out))
    xavier_std = jnp.sqrt(2.0 / (K + H))
    centers = jax.random.normal(kc, (K, H), dtype=jnp.float32) * xavier_std

    x_rec_ref, p_dist_ref = gcml_reference(x, w_enc, b_enc, w_dec, b_dec,
                                           centers, alpha)

    # --- default f32 path: tight tolerances --------------------------------
    x_rec, p_dist = gcml_forward(x, w_enc, b_enc, w_dec, b_dec, centers, alpha)
    jax.block_until_ready((x_rec, p_dist))
    assert x_rec.shape == (B, D_in) and p_dist.shape == (B, K)
    assert jnp.allclose(x_rec, x_rec_ref, atol=1e-4, rtol=1e-4)
    # Student-t term still uses the approx EUP reciprocal -> ~1e-3 tolerance.
    assert jnp.allclose(p_dist, p_dist_ref, atol=3e-3, rtol=3e-3)
    # Exact row normalization inside the kernel -> rows sum to 1 exactly (f32).
    assert jnp.allclose(jnp.sum(p_dist, axis=1), 1.0, atol=1e-5)

    # --- bf16 matmul path (recommended on v6e/v7x): smoke test -------------
    x_rec_b, p_dist_b = gcml_forward(x, w_enc, b_enc, w_dec, b_dec, centers,
                                     alpha, use_bf16_matmul=True)
    jax.block_until_ready((x_rec_b, p_dist_b))
    assert x_rec_b.shape == (B, D_in) and p_dist_b.shape == (B, K)
    assert bool(jnp.all(jnp.isfinite(x_rec_b)))
    assert bool(jnp.all(jnp.isfinite(p_dist_b)))
    assert jnp.allclose(jnp.sum(p_dist_b, axis=1), 1.0, atol=1e-4)

    print("KERNEL_OK")
</pallas_src>

<mosaic_0001>
module attributes {stable_mosaic.version = 11 : i64} {
  func.func @gcml_kernel(%arg0: i32, %arg1: memref<8x128xf32, #tpu.memory_space<vmem>>, %arg2: memref<128x128xf32, #tpu.memory_space<vmem>>, %arg3: memref<1x128xf32, #tpu.memory_space<vmem>>, %arg4: memref<128x128xf32, #tpu.memory_space<vmem>>, %arg5: memref<1x128xf32, #tpu.memory_space<vmem>>, %arg6: memref<128x128xf32, #tpu.memory_space<vmem>>, %arg7: memref<1x128xf32, #tpu.memory_space<vmem>>, %arg8: memref<8x128xf32, #tpu.memory_space<vmem>>, %arg9: memref<8x128xf32, #tpu.memory_space<vmem>>) attributes {dimension_semantics = [#tpu.dimension_semantics<parallel>], iteration_bounds = array<i64: 1>, scalar_prefetch = 0 : i64, scratch_operands = 0 : i64, tpu.core_type = #tpu.core_type<tc>, window_params = [{transform_indices = @transform_0, window_bounds = array<i64: 8, 128>}, {pipeline_mode = #tpu.pipeline_mode<synchronous>, transform_indices = @transform_1, window_bounds = array<i64: 128, 128>}, {pipeline_mode = #tpu.pipeline_mode<synchronous>, transform_indices = @transform_2, window_bounds = array<i64: 1, 128>}, {pipeline_mode = #tpu.pipeline_mode<synchronous>, transform_indices = @transform_3, window_bounds = array<i64: 128, 128>}, {pipeline_mode = #tpu.pipeline_mode<synchronous>, transform_indices = @transform_4, window_bounds = array<i64: 1, 128>}, {pipeline_mode = #tpu.pipeline_mode<synchronous>, transform_indices = @transform_5, window_bounds = array<i64: 128, 128>}, {pipeline_mode = #tpu.pipeline_mode<synchronous>, transform_indices = @transform_6, window_bounds = array<i64: 1, 128>}, {transform_indices = @transform_7, window_bounds = array<i64: 8, 128>}, {transform_indices = @transform_8, window_bounds = array<i64: 8, 128>}]} {
    %c0 = arith.constant 0 : index
    %c0_0 = arith.constant 0 : index
    %0 = vector.load %arg1[%c0, %c0_0] : memref<8x128xf32, #tpu.memory_space<vmem>>, vector<8x128xf32>
    %c0_1 = arith.constant 0 : index
    %c0_2 = arith.constant 0 : index
    %1 = vector.load %arg2[%c0_1, %c0_2] : memref<128x128xf32, #tpu.memory_space<vmem>>, vector<128x128xf32>
    %cst = arith.constant dense<0.000000e+00> : vector<8x128xf32>
    %2 = tpu.matmul %0, %1, %cst {dimension_numbers = #tpu.dot_dimension_numbers<[1], [0], [0], [1], [0, 0, 1, 1], [], []>} : vector<8x128xf32>, vector<128x128xf32>, vector<8x128xf32> -> vector<8x128xf32>
    %c0_3 = arith.constant 0 : index
    %c0_4 = arith.constant 0 : index
    %3 = vector.load %arg3[%c0_3, %c0_4] : memref<1x128xf32, #tpu.memory_space<vmem>>, vector<1x128xf32>
    %4 = vector.broadcast %3 : vector<1x128xf32> to vector<8x128xf32>
    %5 = arith.addf %2, %4 : vector<8x128xf32>
    %c0_5 = arith.constant 0 : index
    %c0_6 = arith.constant 0 : index
    %6 = vector.load %arg4[%c0_5, %c0_6] : memref<128x128xf32, #tpu.memory_space<vmem>>, vector<128x128xf32>
    %cst_7 = arith.constant dense<0.000000e+00> : vector<8x128xf32>
    %7 = tpu.matmul %5, %6, %cst_7 {dimension_numbers = #tpu.dot_dimension_numbers<[1], [0], [0], [1], [0, 0, 1, 1], [], []>} : vector<8x128xf32>, vector<128x128xf32>, vector<8x128xf32> -> vector<8x128xf32>
    %c0_8 = arith.constant 0 : index
    %c0_9 = arith.constant 0 : index
    %8 = vector.load %arg5[%c0_8, %c0_9] : memref<1x128xf32, #tpu.memory_space<vmem>>, vector<1x128xf32>
    %9 = vector.broadcast %8 : vector<1x128xf32> to vector<8x128xf32>
    %10 = arith.addf %7, %9 : vector<8x128xf32>
    %c0_10 = arith.constant 0 : index
    %c0_11 = arith.constant 0 : index
    %11 = vector.load %arg8[%c0_10, %c0_11] : memref<8x128xf32, #tpu.memory_space<vmem>>, vector<8x128xf32>
    tpu.vector_store %arg8[%c0_10, %c0_11], %10 {strides = array<i32>} : memref<8x128xf32, #tpu.memory_space<vmem>>, vector<8x128xf32>,
    %12 = arith.mulf %5, %5 : vector<8x128xf32>
    %cst_12 = arith.constant dense<0.000000e+00> : vector<8xf32>
    %13 = vector.multi_reduction <add>, %12, %cst_12 [1] : vector<8x128xf32> to vector<8xf32>
    %14 = vector.shape_cast %13 : vector<8xf32> to vector<8x1xf32>
    %c0_13 = arith.constant 0 : index
    %c0_14 = arith.constant 0 : index
    %15 = vector.load %arg6[%c0_13, %c0_14] : memref<128x128xf32, #tpu.memory_space<vmem>>, vector<128x128xf32>
    %cst_15 = arith.constant dense<0.000000e+00> : vector<8x128xf32>
    %16 = tpu.matmul %5, %15, %cst_15 {dimension_numbers = #tpu.dot_dimension_numbers<[1], [0], [0], [1], [0, 0, 1, 1], [], []>} : vector<8x128xf32>, vector<128x128xf32>, vector<8x128xf32> -> vector<8x128xf32>
    %c0_16 = arith.constant 0 : index
    %c0_17 = arith.constant 0 : index
    %17 = vector.load %arg7[%c0_16, %c0_17] : memref<1x128xf32, #tpu.memory_space<vmem>>, vector<1x128xf32>
    %18 = vector.broadcast %14 : vector<8x1xf32> to vector<8x128xf32>
    %19 = vector.broadcast %17 : vector<1x128xf32> to vector<8x128xf32>
    %20 = arith.addf %18, %19 : vector<8x128xf32>
    %cst_18 = arith.constant 2.000000e+00 : f32
    %21 = vector.broadcast %cst_18 : f32 to vector<8x128xf32>
    %22 = arith.mulf %21, %16 : vector<8x128xf32>
    %23 = arith.subf %20, %22 : vector<8x128xf32>
    %cst_19 = arith.constant 0.000000e+00 : f32
    %24 = vector.broadcast %cst_19 : f32 to vector<8x128xf32>
    %25 = arith.maximumf %23, %24 : vector<8x128xf32>
    %cst_20 = arith.constant 1.000000e+00 : f32
    %26 = vector.broadcast %cst_20 : f32 to vector<8x128xf32>
    %27 = arith.mulf %25, %26 : vector<8x128xf32>
    %cst_21 = arith.constant 1.000000e+00 : f32
    %28 = vector.broadcast %cst_21 : f32 to vector<8x128xf32>
    %29 = arith.addf %28, %27 : vector<8x128xf32>
    %30 = tpu.reciprocal %29 {approx = true} : vector<8x128xf32> -> vector<8x128xf32>
    %cst_22 = arith.constant dense<0.000000e+00> : vector<8xf32>
    %31 = vector.multi_reduction <add>, %30, %cst_22 [1] : vector<8x128xf32> to vector<8xf32>
    %32 = vector.shape_cast %31 : vector<8xf32> to vector<8x1xf32>
    %cst_23 = arith.constant 1.000000e+00 : f32
    %33 = vector.broadcast %cst_23 : f32 to vector<8x1xf32>
    %34 = arith.divf %33, %32 : vector<8x1xf32>
    %35 = vector.broadcast %34 : vector<8x1xf32> to vector<8x128xf32>
    %36 = arith.mulf %30, %35 : vector<8x128xf32>
    %c0_24 = arith.constant 0 : index
    %c0_25 = arith.constant 0 : index
    %37 = vector.load %arg9[%c0_24, %c0_25] : memref<8x128xf32, #tpu.memory_space<vmem>>, vector<8x128xf32>
    tpu.vector_store %arg9[%c0_24, %c0_25], %36 {strides = array<i32>} : memref<8x128xf32, #tpu.memory_space<vmem>>, vector<8x128xf32>,
    return
  }
  func.func @transform_0(%arg0: i32) -> (i32, i32) {
    %c0_i32 = arith.constant 0 : i32
    %c0_i32_0 = arith.constant 0 : i32
    return %arg0, %c0_i32 : i32, i32
  }
  func.func @transform_1(%arg0: i32) -> (i32, i32) {
    %c0_i32 = arith.constant 0 : i32
    %c0_i32_0 = arith.constant 0 : i32
    %c0_i32_1 = arith.constant 0 : i32
    return %c0_i32, %c0_i32_0 : i32, i32
  }
  func.func @transform_2(%arg0: i32) -> (i32, i32) {
    %c0_i32 = arith.constant 0 : i32
    %c0_i32_0 = arith.constant 0 : i32
    %c0_i32_1 = arith.constant 0 : i32
    return %c0_i32, %c0_i32_0 : i32, i32
  }
  func.func @transform_3(%arg0: i32) -> (i32, i32) {
    %c0_i32 = arith.constant 0 : i32
    %c0_i32_0 = arith.constant 0 : i32
    %c0_i32_1 = arith.constant 0 : i32
    return %c0_i32, %c0_i32_0 : i32, i32
  }
  func.func @transform_4(%arg0: i32) -> (i32, i32) {
    %c0_i32 = arith.constant 0 : i32
    %c0_i32_0 = arith.constant 0 : i32
    %c0_i32_1 = arith.constant 0 : i32
    return %c0_i32, %c0_i32_0 : i32, i32
  }
  func.func @transform_5(%arg0: i32) -> (i32, i32) {
    %c0_i32 = arith.constant 0 : i32
    %c0_i32_0 = arith.constant 0 : i32
    %c0_i32_1 = arith.constant 0 : i32
    return %c0_i32, %c0_i32_0 : i32, i32
  }
  func.func @transform_6(%arg0: i32) -> (i32, i32) {
    %c0_i32 = arith.constant 0 : i32
    %c0_i32_0 = arith.constant 0 : i32
    %c0_i32_1 = arith.constant 0 : i32
    return %c0_i32, %c0_i32_0 : i32, i32
  }
  func.func @transform_7(%arg0: i32) -> (i32, i32) {
    %c0_i32 = arith.constant 0 : i32
    %c0_i32_0 = arith.constant 0 : i32
    return %arg0, %c0_i32 : i32, i32
  }
  func.func @transform_8(%arg0: i32) -> (i32, i32) {
    %c0_i32 = arith.constant 0 : i32
    %c0_i32_0 = arith.constant 0 : i32
    return %arg0, %c0_i32 : i32, i32
  }
}

</mosaic_0001>

<bundles_post_ra>
// kernel: tpu_custom_call.1
= control target key start
LH: loop header
LB: loop body
LE: loop exit
PB: predicated region body
PF: predicated region fallthrough
CT: control target
= control target key end

     0   :  { %14 = vsyncpa [#allocation3], 0  ;;  %s858_s0 = inlined_call_operand.hbm [shape: f32[8,128], index: 0, kind: input, shape index: {}]   ;;  %s859_s1 = inlined_call_operand.hbm [shape: f32[128,128], index: 1, kind: input, shape index: {}]   ;;  %s860_s2 = inlined_call_operand.vmem [shape: f32[1,128], index: 2, kind: input, shape index: {}]   ;;  %s861_s3 = inlined_call_operand.hbm [shape: f32[128,128], index: 3, kind: input, shape index: {}]   ;;  %s862_s4 = inlined_call_operand.vmem [shape: f32[1,128], index: 4, kind: input, shape index: {}]   ;;  %s863_s5 = inlined_call_operand.hbm [shape: f32[128,128], index: 5, kind: input, shape index: {}]   ;;  %s864_s6 = inlined_call_operand.vmem [shape: f32[1,128], index: 6, kind: input, shape index: {}]   ;;  %s865_s7 = inlined_call_operand.hbm [shape: f32[8,128], index: 7, kind: output, shape index: {0}]   ;;  %s866_s8 = inlined_call_operand.hbm [shape: f32[8,128], index: 8, kind: output, shape index: {1}]  }
   0x1   :  { %15 = vsyncpa [#allocation6], 0 }
   0x2   :  { %16 = vsyncpa [#allocation9], 0 }
   0x3   :  { %17 = vsyncpa [#allocation4], 0 }
   0x4   :  { %18 = vsyncpa [#allocation12], 0  ;;  %s713_s27 = smov [#allocation5]  }
   0x5   :  { %s34_s28 = sshll.u32 %s713_s27, 4  ;;  %s35_s28 = int_to_ptr.vmem [resolvable:$true] %s34_s28 }
   0x6   :  { %s591_s29 = scalar_lea.vmem %s35_s28, 2048  ;;  %p596_p1 = scmp.lt.s32.totalorder %s35_s28, %s35_s28 }
   0x7   :  { %p592_p0 = scmp.ne.s32.totalorder %s35_s28, %s591_s29  ;;  %p597_p2 = scmp.lt.s32.totalorder %s591_s29, %s591_s29 }
   0x9   :  { %p598_p3 = por %p597_p2, %p596_p1 }
   0xb   :  { %p599_p4 = pnand %p598_p3, %p592_p0 }
   0xd   :  { %602 = shalt.err (!%p599_p4)
}
   0xe   :  { %s714_s30 = smov 128   ;;  %s715_s9 = smov 8  }
   0xf   :  { %40 = dma.hbm_to_vmem [thread:$0]  %s859_s1, 2048, %s35_s28, [#allocation6], %s714_s30, %s714_s30, %s715_s9  }
  0x10   :  { %s716_s12 = smov [#allocation2]   ;;  %s717_s14 = smov [#allocation7]  }
  0x11   :  { %s25_s13 = sshll.u32 %s716_s12, 4  ;;  %s48_s15 = sshll.u32 %s717_s14, 4  ;;  %s26_s13 = int_to_ptr.vmem [resolvable:$true] %s25_s13  ;;  %s49_s15 = int_to_ptr.vmem [resolvable:$true] %s48_s15 }
  0x12   :  { %s611_s16 = scalar_lea.vmem %s26_s13, 128  ;;  %p616_p6 = scmp.lt.s32.totalorder %s26_s13, %s26_s13 }
  0x13   :  { %p612_p5 = scmp.ne.s32.totalorder %s26_s13, %s611_s16  ;;  %p617_p7 = scmp.lt.s32.totalorder %s611_s16, %s611_s16 }
  0x15   :  { %p618_p8 = por %p617_p7, %p616_p6 }
  0x17   :  { %p619_p9 = pnand %p618_p8, %p612_p5 }
  0x19   :  { %622 = shalt.err (!%p619_p9)
}
  0x1a   :  { %28 = dma.hbm_to_vmem [thread:$0]  %s858_s0, 128, %s26_s13, [#allocation3]  }
  0x1b   :  { %s631_s19 = scalar_lea.vmem %s49_s15, 2048  ;;  %p636_p11 = scmp.lt.s32.totalorder %s49_s15, %s49_s15 }
  0x1c   :  { %p632_p10 = scmp.ne.s32.totalorder %s49_s15, %s631_s19  ;;  %p637_p12 = scmp.lt.s32.totalorder %s631_s19, %s631_s19 }
  0x1e   :  { %p638_p13 = por %p637_p12, %p636_p11 }
  0x20   :  { %p639_p0 = pnand %p638_p13, %p632_p10 }
  0x22   :  { %642 = shalt.err (!%p639_p0)
}
  0x23   :  { %54 = dma.hbm_to_vmem [thread:$0]  %s861_s3, 2048, %s49_s15, [#allocation6], %s714_s30, %s714_s30, %s715_s9  }
  0x24   :  { %s718_s21 = smov [#allocation8]  }
  0x25   :  { %s62_s22 = sshll.u32 %s718_s21, 4  ;;  %s63_s22 = int_to_ptr.vmem [resolvable:$true] %s62_s22 }
  0x26   :  { %s651_s23 = scalar_lea.vmem %s63_s22, 2048  ;;  %p656_p2 = scmp.lt.s32.totalorder %s63_s22, %s63_s22 }
  0x27   :  { %p652_p1 = scmp.ne.s32.totalorder %s63_s22, %s651_s23  ;;  %p657_p3 = scmp.lt.s32.totalorder %s651_s23, %s651_s23 }
  0x29   :  { %p658_p4 = por %p657_p3, %p656_p2 }
  0x2b   :  { %p659_p5 = pnand %p658_p4, %p652_p1 }
  0x2d   :  { %662 = shalt.err (!%p659_p5)
}
  0x2e   :  { %68 = dma.hbm_to_vmem [thread:$0]  %s863_s5, 2048, %s63_s22, [#allocation9], %s714_s30, %s714_s30, %s715_s9  }
  0x2f   :  { %703 = dma.done.wait [#allocation3], 128  }
  0x30   :  { %704 = vsyncadd [#allocation3], 4294967168 }
  0x31   :  { %705 = dma.done.wait [#allocation6], 4096  }
  0x32   :  { %706 = vsyncadd [#allocation6], 4294963200 }
  0x33   :  { %707 = dma.done.wait [#allocation9], 2048  }
  0x34   :  { %708 = vsyncadd [#allocation9], 4294965248  ;;  %v719_v0 = vmov 0.0   ;;  %vm720_vm0 = vmmov 0   ;;  %v99_v1 = vld [vmem:[#allocation5 + $0x78] sm:$0xff]  ;;  %v98_v2 = vld [vmem:[#allocation5 + $0x70] sm:$0xff] }
  0x35   :  { %464 = vmatprep.subr.mxu0 %v719_v0  ;;  %496 = vmatprep.mubr.msk.f32.mxu0 %vm720_vm0, %v719_v0  ;;  %v97_v3 = vld [vmem:[#allocation5 + $0x68] sm:$0xff]  ;;  %v96_v4 = vld [vmem:[#allocation5 + $0x60] sm:$0xff]  ;;  %v192_v5 = vld [vmem:[#allocation7 + $0x78] sm:$0xff] }
  0x36   :  { %499 = vmatprep.subr.mxu1 %v719_v0  ;;  %531 = vmatprep.mubr.msk.f32.mxu1 %vm720_vm0, %v719_v0  ;;  %v95_v6 = vld [vmem:[#allocation5 + $0x58] sm:$0xff]  ;;  %v191_v7 = vld [vmem:[#allocation7 + $0x70] sm:$0xff]  ;;  %v190_v8 = vld [vmem:[#allocation7 + $0x68] sm:$0xff] }
  0x37   :  { %465 = vmatpush3.msra.mxu0 %v99_v1  ;;  %500 = vmatpush3.msra.mxu1 %v192_v5  ;;  %v94_v9 = vld [vmem:[#allocation5 + $0x50] sm:$0xff]  ;;  %v189_v10 = vld [vmem:[#allocation7 + $0x60] sm:$0xff]  ;;  %v93_v11 = vld [vmem:[#allocation5 + $0x48] sm:$0xff] }
  0x38   :  { %466 = vmatprep.subr.mxu0 %v719_v0  ;;  %501 = vmatprep.subr.mxu1 %v719_v0  ;;  %v188_v12 = vld [vmem:[#allocation7 + $0x58] sm:$0xff]  ;;  %v92_v13 = vld [vmem:[#allocation5 + $0x40] sm:$0xff]  ;;  %v187_v14 = vld [vmem:[#allocation7 + $0x50] sm:$0xff] }
  0x39   :  { %467 = vmatpush3.msra.mxu0 %v98_v2  ;;  %502 = vmatpush3.msra.mxu1 %v191_v7  ;;  %v91_v15 = vld [vmem:[#allocation5 + $0x38] sm:$0xff]  ;;  %v186_v16 = vld [vmem:[#allocation7 + $0x48] sm:$0xff]  ;;  %v90_v17 = vld [vmem:[#allocation5 + $0x30] sm:$0xff] }
  0x3a   :  { %468 = vmatprep.subr.mxu0 %v719_v0  ;;  %503 = vmatprep.subr.mxu1 %v719_v0  ;;  %v185_v18 = vld [vmem:[#allocation7 + $0x40] sm:$0xff]  ;;  %v89_v19 = vld [vmem:[#allocation5 + $0x28] sm:$0xff]  ;;  %v184_v20 = vld [vmem:[#allocation7 + $0x38] sm:$0xff] }
  0x3b   :  { %469 = vmatpush3.msra.mxu0 %v97_v3  ;;  %504 = vmatpush3.msra.mxu1 %v190_v8  ;;  %v88_v21 = vld [vmem:[#allocation5 + $0x20] sm:$0xff]  ;;  %v183_v22 = vld [vmem:[#allocation7 + $0x30] sm:$0xff]  ;;  %v87_v23 = vld [vmem:[#allocation5 + $0x18] sm:$0xff] }
  0x3c   :  { %470 = vmatprep.subr.mxu0 %v719_v0  ;;  %505 = vmatprep.subr.mxu1 %v719_v0  ;;  %v182_v24 = vld [vmem:[#allocation7 + $0x28] sm:$0xff]  ;;  %v86_v25 = vld [vmem:[#allocation5 + $0x10] sm:$0xff]  ;;  %v181_v26 = vld [vmem:[#allocation7 + $0x20] sm:$0xff] }
  0x3d   :  { %471 = vmatpush3.msra.mxu0 %v96_v4  ;;  %506 = vmatpush3.msra.mxu1 %v189_v10  ;;  %v85_v27 = vld [vmem:[#allocation5 + $0x8] sm:$0xff]  ;;  %v180_v28 = vld [vmem:[#allocation7 + $0x18] sm:$0xff]  ;;  %v84_v29 = vld [vmem:[#allocation5] sm:$0xff] }
  0x3e   :  { %472 = vmatprep.subr.mxu0 %v719_v0  ;;  %507 = vmatprep.subr.mxu1 %v719_v0  ;;  %v83_v30 = vld [vmem:[#allocation2] sm:$0xff]  ;;  %v179_v32 = vld [vmem:[#allocation7 + $0x10] sm:$0xff]  ;;  %v287_v34 = vld [vmem:[#allocation8 + $0x68] sm:$0xff] }
  0x3f   :  { %473 = vmatpush3.msra.mxu0 %v95_v6  ;;  %508 = vmatpush3.msra.mxu1 %v188_v12  ;;  %v289_v31 = vld [vmem:[#allocation8 + $0x78] sm:$0xff]  ;;  %v288_v33 = vld [vmem:[#allocation8 + $0x70] sm:$0xff]  ;;  %v286_v35 = vld [vmem:[#allocation8 + $0x60] sm:$0xff] }
  0x40   :  { %474 = vmatprep.subr.mxu0 %v719_v0  ;;  %509 = vmatprep.subr.mxu1 %v719_v0  ;;  %v285_v36 = vld [vmem:[#allocation8 + $0x58] sm:$0xff]  ;;  %v284_v37 = vld [vmem:[#allocation8 + $0x50] sm:$0xff]  ;;  %v283_v38 = vld [vmem:[#allocation8 + $0x48] sm:$0xff] }
  0x41   :  { %475 = vmatpush3.msra.mxu0 %v94_v9  ;;  %510 = vmatpush3.msra.mxu1 %v187_v14  ;;  %v282_v39 = vld [vmem:[#allocation8 + $0x40] sm:$0xff]  ;;  %v281_v40 = vld [vmem:[#allocation8 + $0x38] sm:$0xff]  ;;  %v280_v41 = vld [vmem:[#allocation8 + $0x30] sm:$0xff] }
  0x42   :  { %476 = vmatprep.subr.mxu0 %v719_v0  ;;  %511 = vmatprep.subr.mxu1 %v719_v0  ;;  %v279_v42 = vld [vmem:[#allocation8 + $0x28] sm:$0xff]  ;;  %v278_v43 = vld [vmem:[#allocation8 + $0x20] sm:$0xff]  ;;  %v277_v44 = vld [vmem:[#allocation8 + $0x18] sm:$0xff] }
  0x43   :  { %477 = vmatpush3.msra.mxu0 %v93_v11  ;;  %512 = vmatpush3.msra.mxu1 %v186_v16  ;;  %v276_v45 = vld [vmem:[#allocation8 + $0x10] sm:$0xff]  ;;  %v178_v46 = vld [vmem:[#allocation7 + $0x8] sm:$0xff]  ;;  %v177_v48 = vld [vmem:[#allocation7] sm:$0xff] }
  0x44   :  { %478 = vmatprep.subr.mxu0 %v719_v0  ;;  %513 = vmatprep.subr.mxu1 %v719_v0  ;;  %v275_v47 = vld [vmem:[#allocation8 + $0x8] sm:$0xff]  ;;  %v274_v49 = vld [vmem:[#allocation8] sm:$0xff]  ;;  %v410_v50 = vld [vmem:[%s860_s2] ss:$0 sm:$0xff]  ;;  %s721_s2 = smov [#allocation10]  }
  0x45   :  { %479 = vmatpush3.msra.mxu0 %v92_v13  ;;  %514 = vmatpush3.msra.mxu1 %v185_v18  ;;  %v412_v55 = vld [vmem:[%s864_s6] ss:$0 sm:$0xff]  ;;  %s385_s6 = sshll.u32 %s721_s2, 4  ;;  %s386_s6 = int_to_ptr.vmem [resolvable:$true] %s385_s6 }
  0x46   :  { %480 = vmatprep.subr.mxu0 %v719_v0  ;;  %515 = vmatprep.subr.mxu1 %v719_v0  ;;  %v411_v57 = vld [vmem:[%s862_s4] ss:$0 sm:$0xff]  ;;  %s663_s29 = scalar_lea.vmem %s386_s6, 128  ;;  %p668_p7 = scmp.lt.s32.totalorder %s386_s6, %s386_s6 }
  0x47   :  { %481 = vmatpush3.msra.mxu0 %v91_v15  ;;  %516 = vmatpush3.msra.mxu1 %v184_v20  ;;  %p664_p6 = scmp.ne.s32.totalorder %s386_s6, %s663_s29  ;;  %p669_p8 = scmp.lt.s32.totalorder %s663_s29, %s663_s29 }
  0x48   :  { %482 = vmatprep.subr.mxu0 %v719_v0  ;;  %517 = vmatprep.subr.mxu1 %v719_v0 }
  0x49   :  { %483 = vmatpush3.msra.mxu0 %v90_v17  ;;  %518 = vmatpush3.msra.mxu1 %v183_v22  ;;  %p670_p9 = por %p669_p8, %p668_p7 }
  0x4a   :  { %484 = vmatprep.subr.mxu0 %v719_v0  ;;  %519 = vmatprep.subr.mxu1 %v719_v0 }
  0x4b   :  { %485 = vmatpush3.msra.mxu0 %v89_v19  ;;  %520 = vmatpush3.msra.mxu1 %v182_v24  ;;  %p671_p10 = pnand %p670_p9, %p664_p6 }
  0x4c   :  { %486 = vmatprep.subr.mxu0 %v719_v0  ;;  %521 = vmatprep.subr.mxu1 %v719_v0 }
  0x4d   :  { %487 = vmatpush3.msra.mxu0 %v88_v21  ;;  %522 = vmatpush3.msra.mxu1 %v181_v26 }
  0x4e   :  { %488 = vmatprep.subr.mxu0 %v719_v0  ;;  %523 = vmatprep.subr.mxu1 %v719_v0 }
  0x4f   :  { %489 = vmatpush3.msra.mxu0 %v87_v23  ;;  %524 = vmatpush3.msra.mxu1 %v180_v28 }
  0x50   :  { %490 = vmatprep.subr.mxu0 %v719_v0  ;;  %525 = vmatprep.subr.mxu1 %v719_v0 }
  0x51   :  { %491 = vmatpush3.msra.mxu0 %v86_v25  ;;  %526 = vmatpush3.msra.mxu1 %v179_v32 }
  0x52   :  { %492 = vmatprep.subr.mxu0 %v719_v0  ;;  %527 = vmatprep.subr.mxu1 %v719_v0 }
  0x53   :  { %493 = vmatpush3.msra.mxu0 %v85_v27  ;;  %528 = vmatpush3.msra.mxu1 %v178_v46 }
  0x54   :  { %494 = vmatprep.subr.mxu0 %v719_v0  ;;  %529 = vmatprep.subr.mxu1 %v719_v0 }
  0x55   :  { %495 = vmatpush3.msra.mxu0 %v84_v29  ;;  %530 = vmatpush3.msra.mxu1 %v177_v48 }
  0x56   :  { %497 = vmatmul.mubr.f32.vlgmr.msra.gmra.mxu0 %v83_v30  ;;  %534 = vmatprep.subr.mxu0 %v719_v0 }
  0x57   :  { %535 = vmatpush3.msra.mxu0 %v289_v31  ;;  %566 = vmatprep.mubr.msk.f32.mxu0 %vm720_vm0, %v719_v0 }
  0x58   :  { %536 = vmatprep.subr.mxu0 %v719_v0 }
  0x59   :  { %537 = vmatpush3.msra.mxu0 %v288_v33 }
  0x5a   :  { %538 = vmatprep.subr.mxu0 %v719_v0 }
  0x5b   :  { %539 = vmatpush3.msra.mxu0 %v287_v34 }
  0x5c   :  { %540 = vmatprep.subr.mxu0 %v719_v0 }
  0x5d   :  { %541 = vmatpush3.msra.mxu0 %v286_v35 }
  0x5e   :  { %542 = vmatprep.subr.mxu0 %v719_v0 }
  0x5f   :  { %543 = vmatpush3.msra.mxu0 %v285_v36 }
  0x60   :  { %544 = vmatprep.subr.mxu0 %v719_v0 }
  0x61   :  { %545 = vmatpush3.msra.mxu0 %v284_v37 }
  0x62   :  { %546 = vmatprep.subr.mxu0 %v719_v0 }
  0x63   :  { %547 = vmatpush3.msra.mxu0 %v283_v38 }
  0x64   :  { %548 = vmatprep.subr.mxu0 %v719_v0 }
  0x65   :  { %549 = vmatpush3.msra.mxu0 %v282_v39 }
  0x66   :  { %550 = vmatprep.subr.mxu0 %v719_v0 }
  0x67   :  { %551 = vmatpush3.msra.mxu0 %v281_v40 }
  0x68   :  { %552 = vmatprep.subr.mxu0 %v719_v0 }
  0x69   :  { %553 = vmatpush3.msra.mxu0 %v280_v41 }
  0x6a   :  { %554 = vmatprep.subr.mxu0 %v719_v0 }
  0x6b   :  { %555 = vmatpush3.msra.mxu0 %v279_v42 }
  0x6c   :  { %556 = vmatprep.subr.mxu0 %v719_v0 }
  0x6d   :  { %557 = vmatpush3.msra.mxu0 %v278_v43 }
  0x6e   :  { %558 = vmatprep.subr.mxu0 %v719_v0 }
  0x6f   :  { %559 = vmatpush3.msra.mxu0 %v277_v44 }
  0x70   :  { %560 = vmatprep.subr.mxu0 %v719_v0 }
  0x71   :  { %561 = vmatpush3.msra.mxu0 %v276_v45 }
  0x72   :  { %562 = vmatprep.subr.mxu0 %v719_v0 }
  0x73   :  { %563 = vmatpush3.msra.mxu0 %v275_v47 }
  0x74   :  { %564 = vmatprep.subr.mxu0 %v719_v0 }
  0x75   :  { %565 = vmatpush3.msra.mxu0 %v274_v49 }
 0x116   :  { %v173_v51 = vpop.f32.mrf.mxu0 }
 0x117   :  { %v174_v52 = vadd.f32 %v410_v50, %v173_v51 }
 0x118   :  { %v498_v53 = vpop.f32.mrf.mxu0 }
 0x119   :  { %532 = vmatmul.mubr.f32.vlgmr.msra.gmra.mxu1 %v174_v52  ;;  %567 = vmatmul.mubr.f32.vlgmr.msra.gmra.mxu0 %v174_v52  ;;  %v271_v54 = vmul.f32 %v174_v52, %v174_v52 }
 0x11b   :  { %272 = vadd.xlane.f32.xlu0 %v271_v54 }
 0x1a4   :  { %v273_v56 = vpop.xlane.xlu0 %272 }
 0x1a5   :  { %v367_v60 = vadd.f32 %v412_v55, %v273_v56 }
 0x1d9   :  { %v266_v58 = vpop.f32.mrf.mxu1  ;;  %v356_v59 = vpop.f32.mrf.mxu0 }
 0x1da   :  { %v267_v61 = vadd.f32 %v411_v57, %v266_v58  ;;  %v368_v62 = vmul.f32 2.0, %v356_v59 }
 0x1db   :  { %v533_v63 = vpop.f32.mrf.mxu1  ;;  %v568_v0 = vpop.f32.mrf.mxu0 }
 0x1dc   :  { %270 = vst [vmem:[#allocation10] sm:$0xff] %v267_v61  ;;  %v369_v1 = vsub.f32 %v367_v60, %v368_v62 }
 0x1de   :  { %v370_v2 = vmax.f32 %v369_v1, 0.0 }
 0x1e0   :  { %v371_v3 = vadd.f32 1.0, %v370_v2 }
 0x1e2   :  { %579 = vrcp.f32 %v371_v3 }
 0x1ef   :  { %v580_v4 = vpop.eup %579 }
 0x1f0   :  { %373 = vadd.xlane.f32.xlu0 %v580_v4 }
 0x1f1   :  { %674 = shalt.err (!%p671_p10)
}
 0x1f2   :  { %388 = dma.vmem_to_hbm [thread:$0]  %s386_s6, 128, %s865_s7, [#allocation4]  }
 0x1f3   :  { %s722_s9 = smov [#allocation11]  }
 0x1f4   :  { %s395_s10 = sshll.u32 %s722_s9, 4  ;;  %s396_s10 = int_to_ptr.vmem [resolvable:$true] %s395_s10 }
 0x1f5   :  { %s683_s11 = scalar_lea.vmem %s396_s10, 128  ;;  %p688_p12 = scmp.lt.s32.totalorder %s396_s10, %s396_s10 }
 0x1f6   :  { %p684_p11 = scmp.ne.s32.totalorder %s396_s10, %s683_s11  ;;  %p689_p13 = scmp.lt.s32.totalorder %s683_s11, %s683_s11 }
 0x1f8   :  { %p690_p0 = por %p689_p13, %p688_p12 }
 0x1fa   :  { %p691_p1 = pnand %p690_p0, %p684_p11 }
 0x279   :  { %v374_v5 = vpop.xlane.xlu0 %373 }
 0x27a   :  { %581 = vrcp.f32 %v374_v5 }
 0x287   :  { %v582_v6 = vpop.eup %581 }
 0x288   :  { %v377_v7 = vmul.f32 %v582_v6, %v580_v4 }
 0x28a   :  { %378 = vst [vmem:[#allocation11] sm:$0xff] %v377_v7 }
 0x28b   :  { %694 = shalt.err (!%p691_p1)
}
 0x28c   :  { %398 = dma.vmem_to_hbm [thread:$0]  %s396_s10, 128, %s866_s8, [#allocation12]  }
 0x28d   :  { %709 = dma.done.wait [#allocation4], 128  }
 0x28e   :  { %710 = vsyncadd [#allocation4], 4294967168 }
 0x28f   :  { %711 = dma.done.wait [#allocation12], 128  }
 0x290   :  { %712 = vsyncadd [#allocation12], 4294967168 }
 0x291   :  { %405 = vsyncpa [#allocation3], 1 }
 0x292   :  { %406 = vsyncpa [#allocation6], 1 }
 0x293   :  { %407 = vsyncpa [#allocation9], 1 }
 0x294   :  { %408 = vsyncpa [#allocation4], 1 }
 0x295   :  { %409 = vsyncpa [#allocation12], 1 }

</bundles_post_ra>
